<compile_context>
chip_gen: v6e
topology: v6e:2x2x1
jax: 0.10.0
libtpu: 0.0.40
codegen_flags: <defaults>
</compile_context>

<pallas_src>
import functools
import math

import jax
import jax.numpy as jnp
from jax import lax
from jax.experimental import pallas as pl
from jax.experimental.pallas import tpu as pltpu


def _round_up(x, m):
    return ((x + m - 1) // m) * m


def soft_select_attention_kernel(q_ref, s_ref, o_ref, *, scale):
    # q_ref: (tm, dim) bf16 tile of queries; s_ref: (few, dim) bf16 support;
    # o_ref: (tm, dim) f32 output tile.
    q = q_ref[...]
    s = s_ref[...]

    # score[m, f] = sum_d q[m, d] * s[f, d]   (contract on dim; MXU, f32 accumulate)
    score = lax.dot_general(
        q, s,
        dimension_numbers=(((1,), (1,)), ((), ())),
        preferred_element_type=jnp.float32,
    )
    score = score * scale                      # tiny (tm, few) tile

    # Numerically stable softmax over the `few` axis, in f32.
    m = jnp.max(score, axis=-1, keepdims=True)
    e = jnp.exp(score - m)                     # EUP
    denom = jnp.sum(e, axis=-1, keepdims=True)
    att = e / denom

    # center = att @ support  (contraction over `few`; f32 accumulate)
    center = jnp.dot(att.astype(s.dtype), s, preferred_element_type=jnp.float32)
    o_ref[...] = center.astype(o_ref.dtype)


def soft_select_attention(support, query, *, tm=256, compute_dtype=jnp.bfloat16):
    """support: [few, dim], query: [batch, dim]  ->  center: [batch, dim]."""
    few, dim = support.shape
    batch, dim_q = query.shape
    assert dim == dim_q, "support/query feature dims must match"
    scale = float(dim) ** -0.5

    # Row tile: large by default (amortizes per-grid-step overhead, feeds the
    # MXU), clamped + padded for small batches. Always a multiple of 8.
    tm_eff = _round_up(min(tm, _round_up(batch, 8)), 8)
    n_pad = _round_up(batch, tm_eff)

    q = query
    if n_pad != batch:
        q = jnp.pad(q, ((0, n_pad - batch), (0, 0)))
    q = q.astype(compute_dtype)
    s = support.astype(compute_dtype)

    out = pl.pallas_call(
        functools.partial(soft_select_attention_kernel, scale=scale),
        out_shape=jax.ShapeDtypeStruct((n_pad, dim), jnp.float32),
        grid_spec=pltpu.PrefetchScalarGridSpec(
            num_scalar_prefetch=0,
            grid=(n_pad // tm_eff,),
            in_specs=[
                pl.BlockSpec((tm_eff, dim), lambda i: (i, 0)),   # query tile
                pl.BlockSpec((few, dim), lambda i: (0, 0)),      # full support (tiny)
            ],
            out_specs=pl.BlockSpec((tm_eff, dim), lambda i: (i, 0)),
        ),
        compiler_params=pltpu.CompilerParams(
            dimension_semantics=("parallel",),       # v7x: shard batch over 2 TCs
            vmem_limit_bytes=48 * 1024 * 1024,       # headroom for big row tiles
        ),
    )(q, s)

    return out[:batch].astype(query.dtype)


def _reference_f32(support, query):
    scale = support.shape[1] ** -0.5
    score = (query @ support.T) * scale
    att = jax.nn.softmax(score, axis=1)
    return att @ support


def _reference_matched(support, query, compute_dtype):
    # Same precision discipline as the kernel (bf16 matmul operands, f32
    # accumulation and softmax) so the comparison is tight.
    s = support.astype(compute_dtype)
    q = query.astype(compute_dtype)
    scale = support.shape[1] ** -0.5
    score = jnp.dot(q, s.T, preferred_element_type=jnp.float32) * scale
    att = jax.nn.softmax(score, axis=1)
    return jnp.dot(att.astype(compute_dtype), s, preferred_element_type=jnp.float32)


if __name__ == "__main__":
    # Small shapes consistent with the module: 8-shot support, 20 queries,
    # dim=128 (lane-friendly). batch=20 exercises the pad-to-tile path.
    few, batch, dim = 8, 20, 128

    key = jax.random.PRNGKey(0)
    ks, kq = jax.random.split(key)
    support = jax.random.normal(ks, (few, dim), dtype=jnp.float32)
    query = jax.random.normal(kq, (batch, dim), dtype=jnp.float32)

    out = soft_select_attention(support, query)
    jax.block_until_ready(out)
    assert out.shape == (batch, dim)

    # Tight check against a reference using the same bf16-operand / f32-accum
    # precision as the kernel.
    ref_m = _reference_matched(support, query, jnp.bfloat16)
    assert jnp.allclose(out, ref_m, atol=1e-4, rtol=1e-4), "mismatch vs matched-precision reference"

    # Looser check against the pure-f32 module semantics (bf16 precision envelope).
    ref = _reference_f32(support, query)
    assert jnp.allclose(out, ref, atol=1e-1, rtol=5e-2), "mismatch vs f32 reference"

    print("KERNEL_OK")
</pallas_src>

<mosaic_0001>
module attributes {stable_mosaic.version = 11 : i64} {
  func.func @soft_select_attention_kernel(%arg0: i32, %arg1: memref<24x128xbf16, #tpu.memory_space<vmem>>, %arg2: memref<8x128xbf16, #tpu.memory_space<vmem>>, %arg3: memref<24x128xf32, #tpu.memory_space<vmem>>) attributes {dimension_semantics = [#tpu.dimension_semantics<parallel>], iteration_bounds = array<i64: 1>, scalar_prefetch = 0 : i64, scratch_operands = 0 : i64, tpu.core_type = #tpu.core_type<tc>, window_params = [{transform_indices = @transform_0, window_bounds = array<i64: 24, 128>}, {pipeline_mode = #tpu.pipeline_mode<synchronous>, transform_indices = @transform_1, window_bounds = array<i64: 8, 128>}, {transform_indices = @transform_2, window_bounds = array<i64: 24, 128>}]} {
    %c0 = arith.constant 0 : index
    %c0_0 = arith.constant 0 : index
    %0 = vector.load %arg1[%c0, %c0_0] : memref<24x128xbf16, #tpu.memory_space<vmem>>, vector<24x128xbf16>
    %c0_1 = arith.constant 0 : index
    %c0_2 = arith.constant 0 : index
    %1 = vector.load %arg2[%c0_1, %c0_2] : memref<8x128xbf16, #tpu.memory_space<vmem>>, vector<8x128xbf16>
    %cst = arith.constant dense<0.000000e+00> : vector<24x8xf32>
    %2 = tpu.matmul %0, %1, %cst {dimension_numbers = #tpu.dot_dimension_numbers<[1], [1], [0], [0], [0, 0, 1, 0], [], []>} : vector<24x128xbf16>, vector<8x128xbf16>, vector<24x8xf32> -> vector<24x8xf32>
    %cst_3 = arith.constant 0.0883883461 : f32
    %3 = vector.broadcast %cst_3 : f32 to vector<24x8xf32>
    %4 = arith.mulf %2, %3 : vector<24x8xf32>
    %cst_4 = arith.constant dense<0xFF800000> : vector<24xf32>
    %5 = vector.multi_reduction <maximumf>, %4, %cst_4 [1] : vector<24x8xf32> to vector<24xf32>
    %6 = vector.shape_cast %5 : vector<24xf32> to vector<24x1xf32>
    %7 = vector.broadcast %6 : vector<24x1xf32> to vector<24x8xf32>
    %8 = arith.subf %4, %7 : vector<24x8xf32>
    %9 = math.exp %8 : vector<24x8xf32>
    %cst_5 = arith.constant dense<0.000000e+00> : vector<24xf32>
    %10 = vector.multi_reduction <add>, %9, %cst_5 [1] : vector<24x8xf32> to vector<24xf32>
    %11 = vector.shape_cast %10 : vector<24xf32> to vector<24x1xf32>
    %12 = vector.broadcast %11 : vector<24x1xf32> to vector<24x8xf32>
    %13 = arith.divf %9, %12 : vector<24x8xf32>
    %14 = arith.truncf %13 : vector<24x8xf32> to vector<24x8xbf16>
    %cst_6 = arith.constant dense<0.000000e+00> : vector<24x128xf32>
    %15 = tpu.matmul %14, %1, %cst_6 {dimension_numbers = #tpu.dot_dimension_numbers<[1], [0], [0], [1], [0, 0, 1, 1], [], []>} : vector<24x8xbf16>, vector<8x128xbf16>, vector<24x128xf32> -> vector<24x128xf32>
    %c0_7 = arith.constant 0 : index
    %c0_8 = arith.constant 0 : index
    %16 = vector.load %arg3[%c0_7, %c0_8] : memref<24x128xf32, #tpu.memory_space<vmem>>, vector<24x128xf32>
    tpu.vector_store %arg3[%c0_7, %c0_8], %15 {strides = array<i32>} : memref<24x128xf32, #tpu.memory_space<vmem>>, vector<24x128xf32>,
    return
  }
  func.func @transform_0(%arg0: i32) -> (i32, i32) {
    %c0_i32 = arith.constant 0 : i32
    %c0_i32_0 = arith.constant 0 : i32
    return %arg0, %c0_i32 : i32, i32
  }
  func.func @transform_1(%arg0: i32) -> (i32, i32) {
    %c0_i32 = arith.constant 0 : i32
    %c0_i32_0 = arith.constant 0 : i32
    %c0_i32_1 = arith.constant 0 : i32
    return %c0_i32, %c0_i32_0 : i32, i32
  }
  func.func @transform_2(%arg0: i32) -> (i32, i32) {
    %c0_i32 = arith.constant 0 : i32
    %c0_i32_0 = arith.constant 0 : i32
    return %arg0, %c0_i32 : i32, i32
  }
}

</mosaic_0001>

<bundles_post_ra>
// kernel: tpu_custom_call.1
= control target key start
LH: loop header
LB: loop body
LE: loop exit
PB: predicated region body
PF: predicated region fallthrough
CT: control target
= control target key end

     0   :  { %7 = vsyncpa [#allocation3], 0  ;;  %s368_s0 = inlined_call_operand.hbm [shape: bf16[24,128], index: 0, kind: input, shape index: {}]   ;;  %s369_s1 = inlined_call_operand.hbm [shape: bf16[8,128], index: 1, kind: input, shape index: {}]   ;;  %s370_s2 = inlined_call_operand.hbm [shape: f32[24,128], index: 2, kind: output, shape index: {}]  }
   0x1   :  { %8 = vsyncpa [#allocation6], 0 }
   0x2   :  { %9 = vsyncpa [#allocation4], 0  ;;  %s329_s9 = smov [#allocation2]  }
   0x3   :  { %s15_s10 = sshll.u32 %s329_s9, 4  ;;  %s16_s10 = int_to_ptr.vmem [resolvable:$true] %s15_s10 }
   0x4   :  { %s271_s11 = scalar_lea.vmem %s16_s10, 192  ;;  %p276_p1 = scmp.lt.s32.totalorder %s16_s10, %s16_s10 }
   0x5   :  { %p272_p0 = scmp.ne.s32.totalorder %s16_s10, %s271_s11  ;;  %p277_p2 = scmp.lt.s32.totalorder %s271_s11, %s271_s11 }
   0x7   :  { %p278_p3 = por %p277_p2, %p276_p1 }
   0x9   :  { %p279_p4 = pnand %p278_p3, %p272_p0 }
   0xb   :  { %282 = shalt.err (!%p279_p4)
}
   0xc   :  { %s330_s12 = smov 64   ;;  %s331_s13 = smov 4  }
   0xd   :  { %21 = dma.hbm_to_vmem [thread:$0]  %s368_s0, 192, %s16_s10, [#allocation3], %s330_s12, %s330_s12, %s331_s13  }
   0xe   :  { %s332_s16 = smov [#allocation5]  }
   0xf   :  { %s28_s17 = sshll.u32 %s332_s16, 4  ;;  %s29_s17 = int_to_ptr.vmem [resolvable:$true] %s28_s17 }
  0x10   :  { %s291_s18 = scalar_lea.vmem %s29_s17, 64  ;;  %p296_p6 = scmp.lt.s32.totalorder %s29_s17, %s29_s17 }
  0x11   :  { %p292_p5 = scmp.ne.s32.totalorder %s29_s17, %s291_s18  ;;  %p297_p7 = scmp.lt.s32.totalorder %s291_s18, %s291_s18 }
  0x13   :  { %p298_p8 = por %p297_p7, %p296_p6 }
  0x15   :  { %p299_p9 = pnand %p298_p8, %p292_p5 }
  0x17   :  { %302 = shalt.err (!%p299_p9)
}
  0x18   :  { %31 = dma.hbm_to_vmem [thread:$0]  %s369_s1, 64, %s29_s17, [#allocation6]  }
  0x19   :  { %323 = dma.done.wait [#allocation3], 192  }
  0x1a   :  { %324 = vsyncadd [#allocation3], 4294967104 }
  0x1b   :  { %325 = dma.done.wait [#allocation6], 64  }
  0x1c   :  { %326 = vsyncadd [#allocation6], 4294967232  ;;  %v42_v0 = vld [vmem:[#allocation5] sm:$0xf]  ;;  %v249_v1 = vld [vmem:[#allocation2] sm:$0xff]   ;;  %vm104_vm0 = vcmask 64512  }
  0x1d   :  { %229 = vmatprep.subr.bf16.mxu0 %v42_v0  ;;  %231 = vmatprep.mubr.bf16.mxu0 %v249_v1  ;;  %v250_v2 = vld [vmem:[#allocation2 + $0x8] ss:$0 sps:$4 sm:$0xff]   ;;  %vm146_vm1 = vcmask 1043456   ;;  %s333_s0 = smov [#allocation7]  }
  0x1e   :  { %230 = vmatpush3.bf16.xpose.msra.mxu0 %v42_v0  ;;  %241 = vmatprep.subr.msk.bf16.mxu1 %vm146_vm1, %v42_v0  ;;  %v148_v28 = vsel %vm146_vm1, %v42_v0, 0  ;;  %s206_s1 = sshll.u32 %s333_s0, 4  ;;  %s207_s1 = int_to_ptr.vmem [resolvable:$true] %s206_s1 }
  0x1f   :  { %236 = vmatpush3.bf16.msra.mxu1 %v148_v28  ;;  %s303_s21 = scalar_lea.vmem %s207_s1, 384  ;;  %p308_p11 = scmp.lt.s32.totalorder %s207_s1, %s207_s1 }
  0x20   :  { %p304_p10 = scmp.ne.s32.totalorder %s207_s1, %s303_s21  ;;  %p309_p12 = scmp.lt.s32.totalorder %s303_s21, %s303_s21 }
  0x22   :  { %p310_p13 = por %p309_p12, %p308_p11 }
  0x24   :  { %p311_p0 = pnand %p310_p13, %p304_p10 }
  0x25   :  { %232 = vmatmul.mubr.bf16.vlgmr.msra.gmra.mxu0 %v250_v2 }
  0xe5   :  { %v233_v3 = vpop.f32.mrf.mxu0 }
  0xe6   :  { %v103_v4 = vmul.f32 0.088388346, %v233_v3 }
  0xe7   :  { %v87_v5 = vpop.f32.mrf.mxu0 }
  0xe8   :  { %v101_v6 = vmul.f32 0.088388346, %v87_v5  ;;  %v111_v7 = vsel %vm104_vm0, %v103_v4, -inf }
  0xe9   :  { %112 = vmax.xlane.f32.xlu1 %v111_v7  ;;  %v234_v8 = vpop.f32.mrf.mxu0 }
  0xea   :  { %v105_v9 = vsel %vm104_vm0, %v101_v6, -inf }
  0xeb   :  { %106 = vmax.xlane.f32.xlu0 %v105_v9  ;;  %v90_v10 = vpop.f32.mrf.mxu0 }
  0xec   :  { %v102_v11 = vmul.f32 0.088388346, %v90_v10 }
  0xee   :  { %v108_v12 = vsel %vm104_vm0, %v102_v11, -inf }
  0xef   :  { %109 = vmax.xlane.f32.xlu0 %v108_v12 }
 0x172   :  { %v113_v13 = vpop.xlane.xlu1 %112 }
 0x173   :  { %v116_v14 = vsub.f32 %v103_v4, %v113_v13 }
 0x174   :  { %v107_v15 = vpop.xlane.xlu0 %106 }
 0x175   :  { %v114_v16 = vsub.f32 %v101_v6, %v107_v15  ;;  %v121_v17 = vmul.f32 1.442695, %v116_v14 }
 0x177   :  { %v117_v18 = vmul.f32 1.442695, %v114_v16 }
 0x178   :  { %v110_v19 = vpop.xlane.xlu0 %109 }
 0x179   :  { %251 = vpow2.f32 %v117_v18  ;;  %v115_v20 = vsub.f32 %v102_v11, %v110_v19 }
 0x17a   :  { %253 = vpow2.f32 %v121_v17 }
 0x17b   :  { %v119_v21 = vmul.f32 1.442695, %v115_v20 }
 0x17d   :  { %255 = vpow2.f32 %v119_v21 }
 0x186   :  { %v252_v22 = vpop.eup %251 }
 0x187   :  { %v123_v23 = vsel %vm104_vm0, %v252_v22, 0.0  ;;  %v254_v24 = vpop.eup %253 }
 0x188   :  { %124 = vadd.xlane.f32.xlu1 %v123_v23  ;;  %v129_v26 = vsel %vm104_vm0, %v254_v24, 0.0 }
 0x18a   :  { %v256_v25 = vpop.eup %255 }
 0x18b   :  { %v126_v27 = vsel %vm104_vm0, %v256_v25, 0.0 }
 0x18c   :  { %130 = vadd.xlane.f32.xlu1 %v129_v26  ;;  %127 = vadd.xlane.f32.xlu0 %v126_v27 }
 0x211   :  { %v125_v29 = vpop.xlane.xlu1 %124 }
 0x212   :  { %257 = vrcp.f32 %v125_v29 }
 0x215   :  { %v131_v30 = vpop.xlane.xlu1 %130  ;;  %v128_v31 = vpop.xlane.xlu0 %127 }
 0x216   :  { %259 = vrcp.f32 %v131_v30 }
 0x217   :  { %261 = vrcp.f32 %v128_v31 }
 0x21f   :  { %v258_v32 = vpop.eup %257 }
 0x220   :  { %v133_v36 = vmul.f32 %v258_v32, %v252_v22 }
 0x223   :  { %v260_v33 = vpop.eup %259 }
 0x224   :  { %v262_v34 = vpop.eup %261  ;;  %v137_v35 = vmul.f32 %v260_v33, %v254_v24 }
 0x225   :  { %v135_v37 = vmul.f32 %v262_v34, %v256_v25 }
 0x226   :  { %v139_v38 = vpack.c.bf16 %v137_v35, %v137_v35 }
 0x227   :  { %v138_v39 = vpack.c.bf16 %v135_v37, %v133_v36 }
 0x229   :  { %237 = vmatprep.mubr.msk.bf16.mxu1 %vm104_vm0, %v138_v39 }
 0x22a   :  { %238 = vmatmul.mubr.msk.bf16.vlgmr.msra.gmra.mxu1 %vm104_vm0, %v139_v38 }
 0x2ea   :  { %v239_v40 = vpop.f32.mrf.mxu1 }
 0x2eb   :  { %200 = vst [vmem:[#allocation7 + $0x10] sm:$0xff] %v239_v40 }
 0x2ec   :  { %v184_v41 = vpop.f32.mrf.mxu1 }
 0x2ed   :  { %198 = vst [vmem:[#allocation7] sm:$0xff] %v184_v41 }
 0x2ee   :  { %v240_v42 = vpop.f32.mrf.mxu1 }
 0x2f0   :  { %v187_v43 = vpop.f32.mrf.mxu1 }
 0x2f1   :  { %199 = vst [vmem:[#allocation7 + $0x8] sm:$0xff] %v187_v43 }
 0x2f2   :  { %314 = shalt.err (!%p311_p0)
}
 0x2f3   :  { %s334_s22 = smov 128   ;;  %s335_s23 = smov 8  }
 0x2f4   :  { %212 = dma.vmem_to_hbm [thread:$0]  %s207_s1, 384, %s370_s2, [#allocation4], %s334_s22, %s334_s22, %s335_s23  }
 0x2f5   :  { %327 = dma.done.wait [#allocation4], 384  }
 0x2f6   :  { %328 = vsyncadd [#allocation4], 4294966912 }
 0x2f7   :  { %216 = vsyncpa [#allocation3], 1 }
 0x2f8   :  { %217 = vsyncpa [#allocation6], 1 }
 0x2f9   :  { %218 = vsyncpa [#allocation4], 1 }

</bundles_post_ra>
